<compile_context>
chip_gen: v5e
topology: v5e:2x2
jax: 0.10.0
libtpu: 0.0.40
codegen_flags: <defaults>
</compile_context>

<pallas_src>
import jax
import jax.numpy as jnp
from jax import lax
from jax.experimental import pallas as pl
from jax.experimental.pallas import tpu as pltpu


def _round_up(n, m):
    return ((n + m - 1) // m) * m


def _pad_rows(a, rows):
    pad = rows - a.shape[0]
    return a if pad == 0 else jnp.pad(a, ((0, pad), (0, 0)))


def _pick_tq(n):
    """Largest query tile (multiple of 128 when possible) that divides N."""
    if n <= 512:
        return n
    for tq in (512, 384, 256, 128):
        if n % tq == 0:
            return tq
    return n  # fall back to a monolithic query axis


def self_attention(x_nchw, wq, wk, wv, bq, bk, bv, gamma, *, tq=None):
    """x_nchw: (B, C, H, W) f32.  wq/wk: (C//8, C), wv: (C, C) (torch 1x1-conv
    (out, in) layout); bq/bk: (C//8,), bv: (C,); gamma: scalar."""
    B, C, H, W = x_nchw.shape
    N = H * W
    Ck = wq.shape[0]
    assert C % 8 == 0, "channel count must be a multiple of 8"

    TQ = tq if tq is not None else _pick_tq(N)
    assert N % TQ == 0, "query tile must divide H*W"
    NQ = N // TQ

    # Fused projection row groups (bf16-packing friendly alignment):
    #   [0, CkP)           : Q   (rows >= Ck are zero)
    #   [CkP, 2*CkP)       : K   (rows >= Ck are zero)
    #   [2*CkP, 2*CkP + C) : V
    #   row 2*CkP + C      : all-ones row (weight 0, bias 1) -> softmax denom
    #   remaining rows     : zero padding
    CkP = _round_up(Ck, 16)
    Cv = _round_up(C + 1, 8)            # V rows + ones row + zero pad
    Fpad = 2 * CkP + Cv

    w_fused = jnp.concatenate(
        [_pad_rows(wq.astype(jnp.float32), CkP),
         _pad_rows(wk.astype(jnp.float32), CkP),
         wv.astype(jnp.float32),
         jnp.zeros((Cv - C, C), jnp.float32)], axis=0
    ).astype(jnp.bfloat16)                                        # (Fpad, C) bf16

    ones_bias = jnp.zeros((Cv - C, 1), jnp.float32).at[0, 0].set(1.0)
    b_fused = jnp.concatenate(
        [_pad_rows(bq.reshape(Ck, 1).astype(jnp.float32), CkP),
         _pad_rows(bk.reshape(Ck, 1).astype(jnp.float32), CkP),
         bv.reshape(C, 1).astype(jnp.float32),
         ones_bias], axis=0)                                      # (Fpad, 1) f32

    x_bcn = x_nchw.reshape(B, C, N).astype(jnp.float32)           # free reshape
    gamma_arr = jnp.asarray(gamma, jnp.float32).reshape(1, 1)

    def kernel(x_ref, w_ref, b_ref, gamma_ref, o_ref, q_s, k_s, v_s):
        qi = pl.program_id(1)

        # One fused bf16 MXU matmul per batch element; Q/K/V (+ ones row)
        # cached in VMEM scratch for every query tile of this element.
        @pl.when(qi == 0)
        def _():
            x_bf = x_ref[...].astype(jnp.bfloat16)                # (C, N)
            qkv = jnp.dot(w_ref[...], x_bf,
                          preferred_element_type=jnp.float32) + b_ref[...]
            q_s[...] = qkv[0:CkP, :].astype(jnp.bfloat16)
            k_s[...] = qkv[CkP:2 * CkP, :].astype(jnp.bfloat16)
            v_s[...] = qkv[2 * CkP:2 * CkP + Cv, :].astype(jnp.bfloat16)

        col0 = pl.multiple_of(qi * TQ, TQ)
        q = q_s[:, pl.ds(col0, TQ)]                               # (CkP, TQ) bf16
        x_tile = x_ref[:, pl.ds(col0, TQ)]                        # (C, TQ) f32

        # energy[i, j] = <q_i, k_j>  (padded q/k rows are exactly zero).
        energy = lax.dot_general(q, k_s[...], (((0,), (0,)), ((), ())),
                                 preferred_element_type=jnp.float32)   # (TQ, N)

        # Exact full-row softmax numerator; normalization deferred past the MXU.
        m = jnp.max(energy, axis=-1, keepdims=True)
        p = jnp.exp(energy - m).astype(jnp.bfloat16)              # (TQ, N)

        # out_aug[c, i] = sum_j v_aug[c, j] * p[i, j].  The all-ones row of
        # v_aug makes row C the softmax denominator, for free on the MXU.
        out_aug = lax.dot_general(v_s[...], p, (((1,), (1,)), ((), ())),
                                  preferred_element_type=jnp.float32)  # (Cv, TQ)

        denom = out_aug[C:C + 1, :]                               # (1, TQ)
        scale = gamma_ref[0, 0] * pl.reciprocal(denom, approx=True)
        o_ref[...] = out_aug[0:C, :] * scale + x_tile             # lane-dense

    out_bcn = pl.pallas_call(
        kernel,
        out_shape=jax.ShapeDtypeStruct((B, C, N), jnp.float32),
        grid_spec=pltpu.PrefetchScalarGridSpec(
            num_scalar_prefetch=0,
            grid=(B, NQ),
            in_specs=[
                pl.BlockSpec((pl.Squeezed(), C, N), lambda b, qi: (b, 0, 0)),  # x
                pl.BlockSpec((Fpad, C), lambda b, qi: (0, 0)),                 # fused W
                pl.BlockSpec((Fpad, 1), lambda b, qi: (0, 0)),                 # fused b
                pl.BlockSpec((1, 1), lambda b, qi: (0, 0),
                             memory_space=pltpu.MemorySpace.SMEM),             # gamma
            ],
            out_specs=pl.BlockSpec((pl.Squeezed(), C, TQ),
                                   lambda b, qi: (b, 0, qi)),
            scratch_shapes=[
                pltpu.VMEM((CkP, N), jnp.bfloat16),   # Q
                pltpu.VMEM((CkP, N), jnp.bfloat16),   # K
                pltpu.VMEM((Cv, N), jnp.bfloat16),    # V + ones row
            ],
        ),
        compiler_params=pltpu.CompilerParams(
            dimension_semantics=("parallel", "arbitrary"),
            vmem_limit_bytes=48 * 1024 * 1024),
    )(x_bcn, w_fused, b_fused, gamma_arr)

    return out_bcn.reshape(B, C, H, W)                # free reshape back to NCHW


def self_attention_reference(x_nchw, wq, wk, wv, bq, bk, bv, gamma):
    """Pure-JAX f32 reference mirroring the PyTorch forward."""
    B, C, H, W = x_nchw.shape
    N = H * W
    x_cn = x_nchw.reshape(B, C, N)
    q = jnp.einsum('oc,bcn->bon', wq, x_cn) + bq[None, :, None]   # (B, Ck, N)
    k = jnp.einsum('oc,bcn->bon', wk, x_cn) + bk[None, :, None]   # (B, Ck, N)
    v = jnp.einsum('oc,bcn->bon', wv, x_cn) + bv[None, :, None]   # (B, C, N)
    energy = jnp.einsum('bci,bcj->bij', q, k)                     # (B, N, N)
    attn = jax.nn.softmax(energy, axis=-1)
    out = jnp.einsum('bcj,bij->bci', v, attn)                     # (B, C, N)
    out = gamma * out + x_cn
    return out.reshape(B, C, H, W)


if __name__ == "__main__":
    B, C, H, W = 2, 32, 16, 16        # in_dim = 32  ->  C // 8 = 4
    Ck = C // 8

    key = jax.random.PRNGKey(0)
    kx, kq, kk, kv, kbq, kbk, kbv = jax.random.split(key, 7)

    x = jax.random.normal(kx, (B, C, H, W), dtype=jnp.float32)
    wq = 0.1 * jax.random.normal(kq, (Ck, C), dtype=jnp.float32)
    wk = 0.1 * jax.random.normal(kk, (Ck, C), dtype=jnp.float32)
    wv = 0.1 * jax.random.normal(kv, (C, C), dtype=jnp.float32)
    bq = 0.1 * jax.random.normal(kbq, (Ck,), dtype=jnp.float32)
    bk = 0.1 * jax.random.normal(kbk, (Ck,), dtype=jnp.float32)
    bv = 0.1 * jax.random.normal(kbv, (C,), dtype=jnp.float32)

    # gamma = 0 matches nn.Parameter(torch.zeros(1)) at init: output == input.
    out0 = self_attention(x, wq, wk, wv, bq, bk, bv, 0.0)
    jax.block_until_ready(out0)
    ref0 = self_attention_reference(x, wq, wk, wv, bq, bk, bv, 0.0)
    assert jnp.allclose(out0, ref0, atol=1e-5, rtol=1e-5), "mismatch (gamma=0)"

    # Non-zero gamma exercises the attention path; looser tolerance because
    # the MXU matmuls run with bf16 inputs (f32 accumulation).
    ref1 = self_attention_reference(x, wq, wk, wv, bq, bk, bv, 0.5)

    out1 = self_attention(x, wq, wk, wv, bq, bk, bv, 0.5)          # TQ = N (1 tile)
    jax.block_until_ready(out1)
    assert jnp.allclose(out1, ref1, atol=2e-2, rtol=2e-2), "mismatch (gamma=0.5)"

    out2 = self_attention(x, wq, wk, wv, bq, bk, bv, 0.5, tq=128)  # 2 query tiles
    jax.block_until_ready(out2)
    assert jnp.allclose(out2, ref1, atol=2e-2, rtol=2e-2), "mismatch (tq=128)"

    print("KERNEL_OK")
</pallas_src>

<mosaic_0001>
module attributes {stable_mosaic.version = 11 : i64} {
  func.func @kernel(%arg0: i32, %arg1: i32, %arg2: memref<1x32x256xf32, #tpu.memory_space<vmem>>, %arg3: memref<72x32xbf16, #tpu.memory_space<vmem>>, %arg4: memref<72x1xf32, #tpu.memory_space<vmem>>, %arg5: memref<1x1xf32, #tpu.memory_space<smem>>, %arg6: memref<1x32x256xf32, #tpu.memory_space<vmem>>, %arg7: memref<16x256xbf16, #tpu.memory_space<vmem>>, %arg8: memref<16x256xbf16, #tpu.memory_space<vmem>>, %arg9: memref<40x256xbf16, #tpu.memory_space<vmem>>) attributes {dimension_semantics = [#tpu.dimension_semantics<parallel>, #tpu.dimension_semantics<arbitrary>], iteration_bounds = array<i64: 2, 1>, scalar_prefetch = 0 : i64, scratch_operands = 3 : i64, tpu.core_type = #tpu.core_type<tc>, window_params = [{transform_indices = @transform_0, window_bounds = array<i64: 1, 32, 256>}, {pipeline_mode = #tpu.pipeline_mode<synchronous>, transform_indices = @transform_1, window_bounds = array<i64: 72, 32>}, {pipeline_mode = #tpu.pipeline_mode<synchronous>, transform_indices = @transform_2, window_bounds = array<i64: 72, 1>}, {transform_indices = @transform_3, window_bounds = array<i64: 1, 1>}, {transform_indices = @transform_4, window_bounds = array<i64: 1, 32, 256>}]} {
    %c0_i32 = arith.constant 0 : i32
    %0 = arith.cmpi eq, %arg1, %c0_i32 : i32
    %1 = arith.extui %0 : i1 to i32
    %c0_i32_0 = arith.constant 0 : i32
    %2 = arith.cmpi ne, %1, %c0_i32_0 : i32
    scf.if %2 {
      %c0_14 = arith.constant 0 : index
      %c0_15 = arith.constant 0 : index
      %c0_16 = arith.constant 0 : index
      %32 = vector.load %arg2[%c0_14, %c0_15, %c0_16] : memref<1x32x256xf32, #tpu.memory_space<vmem>>, vector<1x32x256xf32>
      %33 = vector.shape_cast %32 : vector<1x32x256xf32> to vector<32x256xf32>
      %34 = arith.truncf %33 : vector<32x256xf32> to vector<32x256xbf16>
      %c0_17 = arith.constant 0 : index
      %c0_18 = arith.constant 0 : index
      %35 = vector.load %arg3[%c0_17, %c0_18] : memref<72x32xbf16, #tpu.memory_space<vmem>>, vector<72x32xbf16>
      %cst_19 = arith.constant dense<0.000000e+00> : vector<72x256xf32>
      %36 = tpu.matmul %35, %34, %cst_19 {dimension_numbers = #tpu.dot_dimension_numbers<[1], [0], [0], [1], [0, 0, 1, 1], [], []>} : vector<72x32xbf16>, vector<32x256xbf16>, vector<72x256xf32> -> vector<72x256xf32>
      %c0_20 = arith.constant 0 : index
      %c0_21 = arith.constant 0 : index
      %37 = vector.load %arg4[%c0_20, %c0_21] : memref<72x1xf32, #tpu.memory_space<vmem>>, vector<72x1xf32>
      %38 = vector.broadcast %37 : vector<72x1xf32> to vector<72x256xf32>
      %39 = arith.addf %36, %38 : vector<72x256xf32>
      %40 = vector.extract_strided_slice %39 {offsets = [0, 0], sizes = [16, 256], strides = [1, 1]} : vector<72x256xf32> to vector<16x256xf32>
      %41 = arith.truncf %40 : vector<16x256xf32> to vector<16x256xbf16>
      %c0_22 = arith.constant 0 : index
      %c0_23 = arith.constant 0 : index
      %42 = vector.load %arg7[%c0_22, %c0_23] : memref<16x256xbf16, #tpu.memory_space<vmem>>, vector<16x256xbf16>
      tpu.vector_store %arg7[%c0_22, %c0_23], %41 {strides = array<i32>} : memref<16x256xbf16, #tpu.memory_space<vmem>>, vector<16x256xbf16>,
      %43 = vector.extract_strided_slice %39 {offsets = [16, 0], sizes = [16, 256], strides = [1, 1]} : vector<72x256xf32> to vector<16x256xf32>
      %44 = arith.truncf %43 : vector<16x256xf32> to vector<16x256xbf16>
      %c0_24 = arith.constant 0 : index
      %c0_25 = arith.constant 0 : index
      %45 = vector.load %arg8[%c0_24, %c0_25] : memref<16x256xbf16, #tpu.memory_space<vmem>>, vector<16x256xbf16>
      tpu.vector_store %arg8[%c0_24, %c0_25], %44 {strides = array<i32>} : memref<16x256xbf16, #tpu.memory_space<vmem>>, vector<16x256xbf16>,
      %46 = vector.extract_strided_slice %39 {offsets = [32, 0], sizes = [40, 256], strides = [1, 1]} : vector<72x256xf32> to vector<40x256xf32>
      %47 = arith.truncf %46 : vector<40x256xf32> to vector<40x256xbf16>
      %c0_26 = arith.constant 0 : index
      %c0_27 = arith.constant 0 : index
      %48 = vector.load %arg9[%c0_26, %c0_27] : memref<40x256xbf16, #tpu.memory_space<vmem>>, vector<40x256xbf16>
      tpu.vector_store %arg9[%c0_26, %c0_27], %47 {strides = array<i32>} : memref<40x256xbf16, #tpu.memory_space<vmem>>, vector<40x256xbf16>,
    } else {
    }
    %c256_i32 = arith.constant 256 : i32
    %3 = arith.muli %arg1, %c256_i32 : i32
    %4 = tpu.assume_multiple %3, 256 : i32
    %c0 = arith.constant 0 : index
    %5 = arith.index_cast %4 : i32 to index
    %6 = vector.load %arg7[%c0, %5] : memref<16x256xbf16, #tpu.memory_space<vmem>>, vector<16x256xbf16>
    %c0_1 = arith.constant 0 : index
    %c0_2 = arith.constant 0 : index
    %7 = arith.index_cast %4 : i32 to index
    %8 = vector.load %arg2[%c0_1, %c0_2, %7] : memref<1x32x256xf32, #tpu.memory_space<vmem>>, vector<1x32x256xf32>
    %9 = vector.shape_cast %8 : vector<1x32x256xf32> to vector<32x256xf32>
    %c0_3 = arith.constant 0 : index
    %c0_4 = arith.constant 0 : index
    %10 = vector.load %arg8[%c0_3, %c0_4] : memref<16x256xbf16, #tpu.memory_space<vmem>>, vector<16x256xbf16>
    %cst = arith.constant dense<0.000000e+00> : vector<256x256xf32>
    %11 = tpu.matmul %6, %10, %cst {dimension_numbers = #tpu.dot_dimension_numbers<[0], [0], [1], [1], [0, 1, 1, 1], [], []>} : vector<16x256xbf16>, vector<16x256xbf16>, vector<256x256xf32> -> vector<256x256xf32>
    %cst_5 = arith.constant dense<0xFF800000> : vector<256xf32>
    %12 = vector.multi_reduction <maximumf>, %11, %cst_5 [1] : vector<256x256xf32> to vector<256xf32>
    %13 = vector.shape_cast %12 : vector<256xf32> to vector<256x1xf32>
    %14 = vector.broadcast %13 : vector<256x1xf32> to vector<256x256xf32>
    %15 = arith.subf %11, %14 : vector<256x256xf32>
    %16 = math.exp %15 : vector<256x256xf32>
    %17 = arith.truncf %16 : vector<256x256xf32> to vector<256x256xbf16>
    %c0_6 = arith.constant 0 : index
    %c0_7 = arith.constant 0 : index
    %18 = vector.load %arg9[%c0_6, %c0_7] : memref<40x256xbf16, #tpu.memory_space<vmem>>, vector<40x256xbf16>
    %cst_8 = arith.constant dense<0.000000e+00> : vector<40x256xf32>
    %19 = tpu.matmul %18, %17, %cst_8 {dimension_numbers = #tpu.dot_dimension_numbers<[1], [1], [0], [0], [0, 0, 1, 0], [], []>} : vector<40x256xbf16>, vector<256x256xbf16>, vector<40x256xf32> -> vector<40x256xf32>
    %20 = vector.extract_strided_slice %19 {offsets = [32, 0], sizes = [1, 256], strides = [1, 1]} : vector<40x256xf32> to vector<1x256xf32>
    %c0_9 = arith.constant 0 : index
    %c0_10 = arith.constant 0 : index
    %21 = memref.load %arg5[%c0_9, %c0_10] : memref<1x1xf32, #tpu.memory_space<smem>>
    %22 = tpu.reciprocal %20 {approx = true} : vector<1x256xf32> -> vector<1x256xf32>
    %23 = vector.broadcast %21 : f32 to vector<1x256xf32>
    %24 = arith.mulf %23, %22 : vector<1x256xf32>
    %25 = vector.extract_strided_slice %19 {offsets = [0, 0], sizes = [32, 256], strides = [1, 1]} : vector<40x256xf32> to vector<32x256xf32>
    %26 = vector.broadcast %24 : vector<1x256xf32> to vector<32x256xf32>
    %27 = arith.mulf %25, %26 : vector<32x256xf32>
    %28 = arith.addf %27, %9 : vector<32x256xf32>
    %c0_11 = arith.constant 0 : index
    %c0_12 = arith.constant 0 : index
    %c0_13 = arith.constant 0 : index
    %29 = vector.load %arg6[%c0_11, %c0_12, %c0_13] : memref<1x32x256xf32, #tpu.memory_space<vmem>>, vector<1x32x256xf32>
    %30 = vector.shape_cast %29 : vector<1x32x256xf32> to vector<32x256xf32>
    %31 = vector.shape_cast %28 : vector<32x256xf32> to vector<1x32x256xf32>
    tpu.vector_store %arg6[%c0_11, %c0_12, %c0_13], %31 {strides = array<i32>} : memref<1x32x256xf32, #tpu.memory_space<vmem>>, vector<1x32x256xf32>,
    return
  }
  func.func @transform_0(%arg0: i32, %arg1: i32) -> (i32, i32, i32) {
    %c0_i32 = arith.constant 0 : i32
    %c0_i32_0 = arith.constant 0 : i32
    %c0_i32_1 = arith.constant 0 : i32
    return %arg0, %c0_i32, %c0_i32_0 : i32, i32, i32
  }
  func.func @transform_1(%arg0: i32, %arg1: i32) -> (i32, i32) {
    %c0_i32 = arith.constant 0 : i32
    %c0_i32_0 = arith.constant 0 : i32
    %c0_i32_1 = arith.constant 0 : i32
    return %c0_i32, %c0_i32_0 : i32, i32
  }
  func.func @transform_2(%arg0: i32, %arg1: i32) -> (i32, i32) {
    %c0_i32 = arith.constant 0 : i32
    %c0_i32_0 = arith.constant 0 : i32
    %c0_i32_1 = arith.constant 0 : i32
    return %c0_i32, %c0_i32_0 : i32, i32
  }
  func.func @transform_3(%arg0: i32, %arg1: i32) -> (i32, i32) {
    %c0_i32 = arith.constant 0 : i32
    %c0_i32_0 = arith.constant 0 : i32
    %c0_i32_1 = arith.constant 0 : i32
    return %c0_i32, %c0_i32_0 : i32, i32
  }
  func.func @transform_4(%arg0: i32, %arg1: i32) -> (i32, i32, i32) {
    %c0_i32 = arith.constant 0 : i32
    %c0_i32_0 = arith.constant 0 : i32
    return %arg0, %c0_i32, %arg1 : i32, i32, i32
  }
}

</mosaic_0001>

<bundles_post_ra>
// kernel: tpu_custom_call.1
= control target key start
LH: loop header
LB: loop body
LE: loop exit
PB: predicated region body
PF: predicated region fallthrough
CT: control target
= control target key end

     0   :  { %s2451_s0 = inlined_call_operand.hbm [shape: f32[2,32,256], index: 0, kind: input, shape index: {}]   ;;  %s2452_s1 = inlined_call_operand.vmem [shape: bf16[72,32], index: 1, kind: input, shape index: {}]   ;;  %s2453_s2 = inlined_call_operand.vmem [shape: f32[72,1], index: 2, kind: input, shape index: {}]   ;;  %s2454_s3 = inlined_call_operand.<no memory space> [shape: f32[1,1], index: 3, kind: input, shape index: {}]   ;;  %s2455_s4 = inlined_call_operand.hbm [shape: f32[2,32,256], index: 4, kind: output, shape index: {}]  }
   0x1   :  { %9 = sst [smem:[#allocation5]] %s2454_s3 }
   0x2   :  { %10 = vsyncpa [#allocation7], 0 }
   0x3   :  { %12 = vsyncpa [#allocation7 + $0x1], 0 }
   0x4   :  { %13 = vsyncpa [#allocation8], 0 }
   0x5   :  { %15 = vsyncpa [#allocation8 + $0x1], 0  ;;  %s1777_s17 = smov 0   ;;  %s1779_s18 = smov 0  }
   0x6   :  { %s1781_s19 = smov 0   ;;  %s1783_s20 = smov 0  }
   0x7   :  { %s1785_s21 = smov 0   ;;  %s1787_s22 = smov 0  }
   0x8 LB: > { %s1309_s3 = sadd.s32 4294967295, %s1742_s22   ;;  %s1310_s23 = sadd.s32 4294967294, %s1742_s22   ;;  %s1742_s22 = sphi %s1787_s22, %s21_s22   ;;  %s1738_s21 = sphi %s1785_s21, %s2523_s21   ;;  %s1734_s20 = sphi %s1783_s20, %s2522_s20   ;;  %s1730_s19 = sphi %s1781_s19, %s2521_s19   ;;  %s1726_s18 = sphi %s1779_s18, %s2520_s18   ;;  %s1722_s17 = sphi %s1777_s17, %s2519_s17  }
   0x9   : > { %s33_s24 = sadd.s32 1, %s1738_s21  ;;  %s40_s25 = sadd.s32 1, %s1730_s19 }
   0xa   : > { %p35_p0 = scmp.ge.s32.totalorder %s33_s24, 2  ;;  %p47_p1 = scmp.ne.s32.totalorder %s1730_s19, %s1726_s18 }
   0xb   : > { %p48_p2 = scmp.eq.s32.totalorder %s1742_s22, 0  ;;  %p53_p3 = scmp.ne.s32.totalorder %s1726_s18, %s1722_s17 }
   0xc   : > { %s2525_s24 = smov (%p35_p0, %s33_s24), 0  ;;  %p54_p5 = scmp.eq.s32.totalorder %s1309_s3, 0 }
   0xd   : > { %p1818_p4 = por %p48_p2, %p47_p1  ;;  %s37_s27 = ssub.s32 %s1738_s21, %s2525_s24 }
   0xe   : > { %p142_p6 = scmp.eq.s32.totalorder %s1309_s3, 1  ;;  %p38_p7 = scmp.eq.s32.totalorder %s37_s27, 0 }
   0xf   : > { %p1824_p8 = por %p54_p5, %p53_p3  ;;  %p148_p10 = scmp.eq.s32.totalorder %s1310_s23, 1 }
  0x10   : > { %p1828_p9 = por %p142_p6, %p47_p1  ;;  %p1312_p12 = scmp.ge.s32.totalorder %s1742_s22, 2 }
  0x11   : > { %s1833_s30 = scalar_select %p38_p7, %s1730_s19, %s40_s25  }
  0x12   : > { %p1835_p11 = por %p148_p10, %p53_p3  ;;  %p1440_p13 = scmp.lt.s32.totalorder %s1742_s22, 2 }
  0x13   : > { %s177_s6 = sand.u32 1, %s1730_s19   ;;  %s1414_s8 = sshll.u32 %s1738_s21, 6 }
  0x14   : > { %s1313_s7 = sshll.u32 %s177_s6, 6  ;;  %s186_s11 = scalar_lea.hbm %s2451_s0, %s1414_s8 }
  0x15   : > { %s181_s12 = scalar_lea.vmem [#allocation6], %s1313_s7  ;;  %s187_s14 = sshll.u32 %s186_s11, 4  ;;  %s188_s14 = int_to_ptr.hbm [resolvable:$true] %s187_s14 }
  0x16   : > { %s189_s13 = sshll.u32 %s181_s12, 4  ;;  %p1433_p0 = pnand %p1440_p13, %p1818_p4  ;;  %s190_s13 = int_to_ptr.vmem [resolvable:$true] %s189_s13 }
  0x17   : > { %p1316_p1 = scmp.ge.s32.totalorder %s1742_s22, 1  ;;  %s178_s15 = scalar_lea.sflag [#allocation7], %s177_s6 }
  0x18   : > { %s1744_s16 = smov 256   ;;  %s1745_s3 = smov 16  }
  0x19   : > { %1435 = dma.hbm_to_vmem [thread:$0]  (!%p1433_p0), %s188_s14, 1024, %s190_s13, %s178_s15, %s1744_s16, %s1744_s16, %s1745_s3  }
  0x1a   : > { %p197_p2 = scmp.lt.s32.totalorder %s1742_s22, 3 }
  0x1c   : > { %p198_p3 = pnand %p1316_p1, %p197_p2 }
  0x1e   : > { %201 = sbr.rel (%p198_p3) target bundleno = 1147 (0x47b), region = 36 }
  0x23   : > { %s1851_s23 = sand.u32 1, %s1726_s18  }
  0x24   : > { %s1317_s25 = sshll.u32 %s1851_s23, 6  ;;  %s204_s27 = scalar_lea.sflag [#allocation7], %s1851_s23 }
  0x25   : > { %s1857_s26 = scalar_lea.vmem [#allocation6], %s1317_s25 }
  0x26   : > { %1713 = dma.done.wait (%p1824_p8), %s204_s27, 1024  }
  0x27   : > { %1715 = vsyncadd (%p1824_p8), %s204_s27, 4294966272  ;;  %v1746_v0 = vmov 0   ;;  %v243_v1 = vld [vmem:[%s1857_s26 + $0x20] sm:$0xff]  ;;  %v245_v2 = vld [vmem:[%s1857_s26 + $0x30] sm:$0xff]  ;;  %vm337_vm0 = vcmask 261120   ;;  %vm500_vm1 = vcmask 130048  }
  0x28   : > { %1495 = vset.pattern.permute.xlu0 %v1746_v0  ;;  %1496 = vset.pattern.permute.xlu1 %v1746_v0  ;;  %v244_v3 = vld [vmem:[%s1857_s26 + $0x28] sm:$0xff]  ;;  %v249_v4 = vpack.c.bf16 %v245_v2, %v243_v1  ;;  %v246_v5 = vld [vmem:[%s1857_s26 + $0x38] sm:$0xff]  ;;  %v239_v6 = vld [vmem:[%s1857_s26] sm:$0xff]  ;;  %s2389_s28 = sld [smem:[#allocation5]]  ;;  %s2398_s6 = scalar_lea.vmem [#allocation9], %s1317_s25 }
  0x29   : > { %v241_v7 = vld [vmem:[%s1857_s26 + $0x10] sm:$0xff]  ;;  %v250_v8 = vpack.c.bf16 %v246_v5, %v244_v3  ;;  %v240_v9 = vld [vmem:[%s1857_s26 + $0x8] sm:$0xff]  ;;  %v242_v10 = vld [vmem:[%s1857_s26 + $0x18] sm:$0xff]  ;;  %s1427_s25 = sshll.u32 %s1734_s20, 6  ;;  %s1218_s20 = sshll.u32 %s2398_s6, 4  ;;  %s1219_s20 = int_to_ptr.vmem [resolvable:$true] %s1218_s20 }
  0x2a   : > { %359 = vmatpush.bf16.msra.mxu0 %v249_v4  ;;  %v247_v11 = vpack.c.bf16 %v241_v7, %v239_v6  ;;  %v260_v12 = vld [vmem:[%s2453_s2] sm:$0xff]  ;;  %v248_v13 = vpack.c.bf16 %v242_v10, %v240_v9  ;;  %v261_v15 = vld [vmem:[%s2453_s2 + $0x8] sm:$0xff]  ;;  %v262_v17 = vld [vmem:[%s2453_s2 + $0x10] sm:$0xff]  ;;  %s1217_s9 = scalar_lea.hbm %s2455_s4, %s1427_s25  ;;  %s1680_s15 = scalar_lea.hbm %s2455_s4, 128 }
  0x2b   : > { %392 = vmatpush.bf16.msra.mxu1 %v250_v8  ;;  %271 = vperm.xlu0 %1495, %v260_v12   ;;  %v1415_v14 = vld [vmem:[%s2452_s1] sm:$0xff]  ;;  %v1416_v16 = vld [vmem:[%s2452_s1 + $0x8] sm:$0xff]  ;;  %v263_v19 = vld [vmem:[%s2453_s2 + $0x18] sm:$0xff]  ;;  %s1220_s10 = sshll.u32 %s1217_s9, 4  ;;  %s1221_s10 = int_to_ptr.hbm [resolvable:$true] %s1220_s10 }
  0x2c   : > { %281 = vperm.xlu1 %1496, %v262_v17   ;;  %s1674_s11 = sshra.s32 %s1221_s10, 4  ;;  %s1675_s11 = int_to_ptr.hbm [resolvable:$true] %s1674_s11 }
  0x2d   : > { %s1676_s12 = scalar_lea.hbm %s1675_s11, 64  ;;  %p1681_p7 = scmp.lt.s32.totalorder %s1675_s11, %s2455_s4 }
  0x2e   : > { %360 = vmatpush.bf16.msra.mxu0 %v247_v11  ;;  %p1677_p4 = scmp.ne.s32.totalorder %s1675_s11, %s1676_s12  ;;  %p1682_p8 = scmp.lt.s32.totalorder %s1680_s15, %s1676_s12 }
  0x2f   : > { %393 = vmatpush.bf16.msra.mxu1 %v248_v13 }
  0x30   : > { %p1678_p5 = pnand %p1677_p4, %p1828_p9  ;;  %p1683_p10 = por %p1682_p8, %p1681_p7 }
  0x31   : > { %1335 = vmatmul.msk.bf16.vlgmr.msra.gmra.mxu0 %vm337_vm0, %v1415_v14 }
  0x32   : > { %1340 = vmatmul.msk.bf16.vlgmr.msra.gmra.mxu1 %vm337_vm0, %v1415_v14  ;;  %p1679_p6 = pneg %p1678_p5 }
  0x33   : > { %276 = vperm.xlu0 %1495, %v261_v15  }
  0x34   : > { %286 = vperm.xlu1 %1496, %v263_v19   ;;  %p1684_p13 = pnand %p1683_p10, %p1679_p6 }
  0x41   : > { %1336 = vmatmul.msk.bf16.gmra.mxu0 %vm337_vm0, %v1416_v16 }
  0x42   : > { %1341 = vmatmul.msk.bf16.gmra.mxu1 %vm337_vm0, %v1416_v16 }
  0x9d   : > { %v272_v18 = vpop.permute.xlu0 %271 }
  0x9e   : > { %v282_v37 = vpop.permute.xlu1 %281 }
  0xa5   : > { %v277_v25 = vpop.permute.xlu0 %276 }
  0xa6   : > { %v287_v43 = vpop.permute.xlu1 %286 }
  0xae   : > { %v362_v20 = vpop.f32.mrf.mxu0 }
  0xaf   : > { %v363_v21 = vadd.f32 %v362_v20, %v272_v18  ;;  %v395_v22 = vpop.f32.mrf.mxu1 }
  0xb0   : > { %v396_v23 = vadd.f32 %v395_v22, %v272_v18 }
  0xb2   : > { %v419_v24 = vpack.c.bf16 %v396_v23, %v363_v21 }
  0xb4   : > { %421 = vst [vmem:[#allocation2] sm:$0xff] %v419_v24 }
  0xb6   : > { %v364_v26 = vpop.f32.mrf.mxu0 }
  0xb7   : > { %v365_v27 = vadd.f32 %v364_v26, %v277_v25  ;;  %v397_v28 = vpop.f32.mrf.mxu1 }
  0xb8   : > { %v398_v29 = vadd.f32 %v397_v28, %v277_v25 }
  0xba   : > { %v420_v30 = vpack.c.bf16 %v398_v29, %v365_v27 }
  0xbb   : > { %v1419_v31 = vld [vmem:[#allocation2 + $0x4] sm:$0xf]  ;;  %v1347_v32 = vld [vmem:[#allocation2] sm:$0xf] }
  0xbc   : > { %422 = vst [vmem:[#allocation2 + $0x8] sm:$0xff] %v420_v30 }
  0xbe   : > { %v367_v38 = vpop.f32.mrf.mxu0 }
  0xbf   : > { %v400_v39 = vpop.f32.mrf.mxu1  ;;  %v368_v40 = vadd.f32 %v367_v38, %v282_v37 }
  0xc0   : > { %v401_v41 = vadd.f32 %v400_v39, %v282_v37 }
  0xc2   : > { %v423_v42 = vpack.c.bf16 %v401_v41, %v368_v40 }
  0xc3   : > { %v1349_v33 = vld [vmem:[#allocation2 + $0x8] sm:$0xf0]  ;;  %v1420_v34 = vld [vmem:[#allocation2 + $0x4] sm:$0xf0] }
  0xc4   : > { %v1348_v35 = vor.u32 %v1420_v34, %v1347_v32  ;;  %v1352_v36 = vor.u32 %v1419_v31, %v1349_v33  ;;  %425 = vst [vmem:[#allocation3] sm:$0xff] %v423_v42 }
  0xc6   : > { %466 = vxpose.binary.xlu2.c.b16.start.end [1/2] (short) %v1352_v36, %v1348_v35, 128  ;;  %v369_v44 = vpop.f32.mrf.mxu0 }
  0xc7   : > { %v402_v45 = vpop.f32.mrf.mxu1  ;;  %v370_v46 = vadd.f32 %v369_v44, %v287_v43 }
  0xc8   : > { %v403_v47 = vadd.f32 %v402_v45, %v287_v43 }
  0xca   : > { %v424_v48 = vpack.c.bf16 %v403_v47, %v370_v46  ;;  %v1417_v47 = vld [vmem:[%s2452_s1 + $0x10] sm:$0xff] }
  0xcb   : > { %v1355_v49 = vld [vmem:[#allocation3] sm:$0xf]  ;;  %v1421_v50 = vld [vmem:[#allocation3 + $0x4] sm:$0xf]  ;;  %1337 = vmatmul.msk.bf16.gmra.mxu0 %vm337_vm0, %v1417_v47  ;;  %1342 = vmatmul.msk.bf16.gmra.mxu1 %vm337_vm0, %v1417_v47 }
  0xcc   : > { %426 = vst [vmem:[#allocation3 + $0x8] sm:$0xff] %v424_v48 }
  0xd3   : > { %v1422_v51 = vld [vmem:[#allocation3 + $0x4] sm:$0xf0]  ;;  %v1357_v52 = vld [vmem:[#allocation3 + $0x8] sm:$0xf0] }
  0xd4   : > { %v1356_v53 = vor.u32 %v1422_v51, %v1355_v49  ;;  %v1360_v54 = vor.u32 %v1421_v50, %v1357_v52 }
  0xd6   : > { %556 = vmatpush.bf16.msra.mxu2 %v1356_v53  ;;  %645 = vmatpush.bf16.msra.mxu3 %v1360_v54 }
 0x128   : > { %1497 = vset.pattern.permute.xlu2 %v1746_v0 }
 0x167   : > { %v474_v55 = vpop.trf.xlu2 }
 0x168   : > { %1361 = vmatmul.msk.bf16.vlgmr.msra.gmra.mxu2 %vm500_vm1, %v474_v55  ;;  %1377 = vmatmul.msk.bf16.vlgmr.msra.gmra.mxu3 %vm500_vm1, %v474_v55 }
 0x16f   : > { %v475_v56 = vpop.trf.xlu2 }
 0x177   : > { %v476_v57 = vpop.trf.xlu2 }
 0x178   : > { %1362 = vmatmul.msk.bf16.gmra.mxu2 %vm500_vm1, %v476_v57  ;;  %1378 = vmatmul.msk.bf16.gmra.mxu3 %vm500_vm1, %v476_v57 }
 0x17f   : > { %v477_v58 = vpop.trf.xlu2 }
 0x187   : > { %v478_v59 = vpop.trf.xlu2 }
 0x188   : > { %1363 = vmatmul.msk.bf16.gmra.mxu2 %vm500_vm1, %v478_v59  ;;  %1379 = vmatmul.msk.bf16.gmra.mxu3 %vm500_vm1, %v478_v59 }
 0x18f   : > { %v479_v60 = vpop.trf.xlu2 }
 0x197   : > { %v480_v61 = vpop.trf.xlu2 }
 0x198   : > { %1364 = vmatmul.msk.bf16.gmra.mxu2 %vm500_vm1, %v480_v61  ;;  %1380 = vmatmul.msk.bf16.gmra.mxu3 %vm500_vm1, %v480_v61 }
 0x19f   : > { %v481_v62 = vpop.trf.xlu2 }
 0x1a7   : > { %v482_v63 = vpop.trf.xlu2 }
 0x1a8   : > { %1365 = vmatmul.msk.bf16.gmra.mxu2 %vm500_vm1, %v482_v63  ;;  %1381 = vmatmul.msk.bf16.gmra.mxu3 %vm500_vm1, %v482_v63 }
 0x1af   : > { %v483_v0 = vpop.trf.xlu2 }
 0x1b7   : > { %v484_v1 = vpop.trf.xlu2 }
 0x1b8   : > { %1366 = vmatmul.msk.bf16.gmra.mxu2 %vm500_vm1, %v484_v1  ;;  %1382 = vmatmul.msk.bf16.gmra.mxu3 %vm500_vm1, %v484_v1 }
 0x1bf   : > { %v485_v2 = vpop.trf.xlu2 }
 0x1c7   : > { %v486_v3 = vpop.trf.xlu2 }
 0x1c8   : > { %1367 = vmatmul.msk.bf16.gmra.mxu2 %vm500_vm1, %v486_v3  ;;  %1383 = vmatmul.msk.bf16.gmra.mxu3 %vm500_vm1, %v486_v3 }
 0x1cf   : > { %v487_v4 = vpop.trf.xlu2 }
 0x1d7   : > { %v488_v5 = vpop.trf.xlu2 }
 0x1d8   : > { %1368 = vmatmul.msk.bf16.gmra.mxu2 %vm500_vm1, %v488_v5  ;;  %1384 = vmatmul.msk.bf16.gmra.mxu3 %vm500_vm1, %v488_v5  ;;  %v264_v5 = vld [vmem:[%s2453_s2 + $0x20] sm:$0xff] }
 0x1df   : > { %v489_v37 = vpop.trf.xlu2 }
 0x1e8   : > { %1369 = vmatmul.msk.bf16.gmra.mxu2 %vm500_vm1, %v475_v56  ;;  %1385 = vmatmul.msk.bf16.gmra.mxu3 %vm500_vm1, %v475_v56 }
 0x1eb   : > { %v1911_v6 = vpop.f32.mrf.mxu2  ;;  %v1913_v7 = vpop.f32.mrf.mxu3 }
 0x1f3   : > { %v1915_v8 = vpop.f32.mrf.mxu2  ;;  %v1917_v9 = vpop.f32.mrf.mxu3 }
 0x1f8   : > { %1370 = vmatmul.msk.bf16.gmra.mxu2 %vm500_vm1, %v477_v58  ;;  %1386 = vmatmul.msk.bf16.gmra.mxu3 %vm500_vm1, %v477_v58  ;;  %v727_v58 = vmax.f32 %v1911_v6, %v1913_v7 }
 0x1fb   : > { %v1921_v10 = vpop.f32.mrf.mxu2  ;;  %v1923_v11 = vpop.f32.mrf.mxu3 }
 0x1fc   : > { %v733_v54 = vmax.f32 %v1921_v10, %v1923_v11 }
 0x203   : > { %v1925_v12 = vpop.f32.mrf.mxu2  ;;  %v1927_v13 = vpop.f32.mrf.mxu3 }
 0x204   : > { %v736_v59 = vmax.f32 %v1925_v12, %v1927_v13 }
 0x208   : > { %1371 = vmatmul.msk.bf16.gmra.mxu2 %vm500_vm1, %v479_v60  ;;  %1387 = vmatmul.msk.bf16.gmra.mxu3 %vm500_vm1, %v479_v60 }
 0x20b   : > { %v1931_v14 = vpop.f32.mrf.mxu2  ;;  %v1933_v15 = vpop.f32.mrf.mxu3 }
 0x20c   : > { %v739_v50 = vmax.f32 %v1931_v14, %v1933_v15 }
 0x213   : > { %v1935_v16 = vpop.f32.mrf.mxu2  ;;  %v1937_v17 = vpop.f32.mrf.mxu3 }
 0x214   : > { %v742_v55 = vmax.f32 %v1935_v16, %v1937_v17 }
 0x218   : > { %1372 = vmatmul.msk.bf16.gmra.mxu2 %vm500_vm1, %v481_v62  ;;  %1388 = vmatmul.msk.bf16.gmra.mxu3 %vm500_vm1, %v481_v62  ;;  %v730_v62 = vmax.f32 %v1915_v8, %v1917_v9 }
 0x21b   : > { %v1941_v18 = vpop.f32.mrf.mxu2  ;;  %v1943_v19 = vpop.f32.mrf.mxu3 }
 0x21c   : > { %v745_v45 = vmax.f32 %v1941_v18, %v1943_v19 }
 0x223   : > { %v1945_v20 = vpop.f32.mrf.mxu2  ;;  %v1947_v21 = vpop.f32.mrf.mxu3 }
 0x224   : > { %v748_v51 = vmax.f32 %v1945_v20, %v1947_v21 }
 0x228   : > { %1373 = vmatmul.msk.bf16.gmra.mxu2 %vm500_vm1, %v483_v0  ;;  %1389 = vmatmul.msk.bf16.gmra.mxu3 %vm500_vm1, %v483_v0 }
 0x22b   : > { %v1951_v22 = vpop.f32.mrf.mxu2  ;;  %v1953_v23 = vpop.f32.mrf.mxu3 }
 0x22c   : > { %v751_v40 = vmax.f32 %v1951_v22, %v1953_v23 }
 0x233   : > { %v1955_v24 = vpop.f32.mrf.mxu2  ;;  %v1957_v25 = vpop.f32.mrf.mxu3 }
 0x234   : > { %v754_v46 = vmax.f32 %v1955_v24, %v1957_v25 }
 0x238   : > { %1374 = vmatmul.msk.bf16.gmra.mxu2 %vm500_vm1, %v485_v2  ;;  %1390 = vmatmul.msk.bf16.gmra.mxu3 %vm500_vm1, %v485_v2 }
 0x23b   : > { %v1961_v26 = vpop.f32.mrf.mxu2  ;;  %v1963_v27 = vpop.f32.mrf.mxu3 }
 0x23c   : > { %v757_v35 = vmax.f32 %v1961_v26, %v1963_v27 }
 0x243   : > { %v1965_v28 = vpop.f32.mrf.mxu2  ;;  %v1967_v29 = vpop.f32.mrf.mxu3 }
 0x244   : > { %v760_v41 = vmax.f32 %v1965_v28, %v1967_v29 }
 0x248   : > { %1375 = vmatmul.msk.bf16.gmra.mxu2 %vm500_vm1, %v487_v4  ;;  %1391 = vmatmul.msk.bf16.gmra.mxu3 %vm500_vm1, %v487_v4 }
 0x24b   : > { %v1971_v30 = vpop.f32.mrf.mxu2  ;;  %v1973_v31 = vpop.f32.mrf.mxu3 }
 0x24c   : > { %v763_v32 = vmax.f32 %v1971_v30, %v1973_v31 }
 0x24e   : > { %764 = vmax.xlane.f32.xlu1 %v763_v32  ;;  %v265_v32 = vld [vmem:[%s2453_s2 + $0x28] sm:$0xff] }
 0x253   : > { %v1977_v33 = vpop.f32.mrf.mxu2  ;;  %v1979_v34 = vpop.f32.mrf.mxu3 }
 0x254   : > { %v766_v36 = vmax.f32 %v1977_v33, %v1979_v34 }
 0x256   : > { %758 = vmax.xlane.f32.xlu1 %v757_v35  ;;  %767 = vmax.xlane.f32.xlu0 %v766_v36 }
 0x258   : > { %1376 = vmatmul.msk.bf16.gmra.mxu2 %vm500_vm1, %v489_v37  ;;  %1392 = vmatmul.msk.bf16.gmra.mxu3 %vm500_vm1, %v489_v37 }
 0x25b   : > { %v1987_v38 = vpop.f32.mrf.mxu2  ;;  %v1989_v39 = vpop.f32.mrf.mxu3 }
 0x25c   : > { %v769_v42 = vmax.f32 %v1987_v38, %v1989_v39 }
 0x25e   : > { %752 = vmax.xlane.f32.xlu1 %v751_v40  ;;  %761 = vmax.xlane.f32.xlu0 %v760_v41 }
 0x25f   : > { %770 = vmax.xlane.f32.xlu2 %v769_v42 }
 0x263   : > { %v1997_v43 = vpop.f32.mrf.mxu2  ;;  %v1999_v44 = vpop.f32.mrf.mxu3 }
 0x266   : > { %746 = vmax.xlane.f32.xlu1 %v745_v45  ;;  %755 = vmax.xlane.f32.xlu0 %v754_v46 }
 0x26b   : > { %v2010_v48 = vpop.f32.mrf.mxu2  ;;  %v2012_v49 = vpop.f32.mrf.mxu3 }
 0x26e   : > { %740 = vmax.xlane.f32.xlu1 %v739_v50  ;;  %749 = vmax.xlane.f32.xlu0 %v748_v51 }
 0x273   : > { %v2018_v52 = vpop.f32.mrf.mxu2  ;;  %v2020_v53 = vpop.f32.mrf.mxu3 }
 0x276   : > { %734 = vmax.xlane.f32.xlu1 %v733_v54  ;;  %743 = vmax.xlane.f32.xlu0 %v742_v55  ;;  %v772_v55 = vmax.f32 %v1997_v43, %v1999_v44 }
 0x27b   : > { %v2026_v56 = vpop.f32.mrf.mxu2  ;;  %v2028_v57 = vpop.f32.mrf.mxu3 }
 0x27e   : > { %728 = vmax.xlane.f32.xlu1 %v727_v58  ;;  %737 = vmax.xlane.f32.xlu0 %v736_v59 }
 0x283   : > { %v2034_v60 = vpop.f32.mrf.mxu2  ;;  %v2036_v61 = vpop.f32.mrf.mxu3 }
 0x286   : > { %731 = vmax.xlane.f32.xlu0 %v730_v62 }
 0x28b   : > { %v2040_v63 = vpop.f32.mrf.mxu2  ;;  %v2042_v0 = vpop.f32.mrf.mxu3 }
 0x28c   : > { %2475 = vst [vmem:[#allocation12_spill] sm:$0xff] %v2040_v63  ;;  %v787_v1 = vmax.f32 %v2040_v63, %v2042_v0 }
 0x28d   : > { %2476 = vst [vmem:[#allocation13_spill] sm:$0xff] %v2042_v0 }
 0x28e   : > { %788 = vmax.xlane.f32.xlu2 %v787_v1 }
 0x293   : > { %v2046_v2 = vpop.f32.mrf.mxu2  ;;  %v2048_v3 = vpop.f32.mrf.mxu3 }
 0x294   : > { %2477 = vst [vmem:[#allocation14_spill] sm:$0xff] %v2046_v2  ;;  %v790_v4 = vmax.f32 %v2046_v2, %v2048_v3 }
 0x295   : > { %2478 = vst [vmem:[#allocation15_spill] sm:$0xff] %v2048_v3 }
 0x296   : > { %791 = vmax.xlane.f32.xlu2 %v790_v4 }
 0x297   : > { %291 = vperm.xlu1 %1496, %v264_v5  }
 0x29a   : > { %296 = vperm.xlu0 %1495, %v265_v32  }
 0x29b   : > { %v2058_v35 = vpop.f32.mrf.mxu2  ;;  %v2060_v36 = vpop.f32.mrf.mxu3 }
 0x2a3   : > { %v2062_v37 = vpop.f32.mrf.mxu2  ;;  %v2064_v40 = vpop.f32.mrf.mxu3 }
 0x2ab   : > { %v2066_v41 = vpop.f32.mrf.mxu2  ;;  %v2068_v42 = vpop.f32.mrf.mxu3 }
 0x2ac   : > { %2479 = vst [vmem:[#allocation16_spill] sm:$0xff] %v2066_v41  ;;  %v799_v51 = vmax.f32 %v2066_v41, %v2068_v42 }
 0x2ad   : > { %2480 = vst [vmem:[#allocation17_spill] sm:$0xff] %v2068_v42 }
 0x2b3   : > { %v2070_v45 = vpop.f32.mrf.mxu2  ;;  %v2072_v46 = vpop.f32.mrf.mxu3 }
 0x2b4   : > { %2481 = vst [vmem:[#allocation18_spill] sm:$0xff] %v2070_v45 }
 0x2b5   : > { %2482 = vst [vmem:[#allocation19_spill] sm:$0xff] %v2072_v46 }
 0x2bb   : > { %v2074_v47 = vpop.f32.mrf.mxu2  ;;  %v2076_v50 = vpop.f32.mrf.mxu3 }
 0x2bc   : > { %2483 = vst [vmem:[#allocation20_spill] sm:$0xff] %v2074_v47  ;;  %v805_v4 = vmax.f32 %v2074_v47, %v2076_v50 }
 0x2bd   : > { %2484 = vst [vmem:[#allocation21_spill] sm:$0xff] %v2076_v50 }
 0x2c1   : > { %v765_v54 = vpop.xlane.xlu1 %764  ;;  %800 = vmax.xlane.f32.xlu1 %v799_v51  ;;  %v1418_v51 = vld [vmem:[%s2452_s1 + $0x18] sm:$0xff] }
 0x2c2   : > { %v847_v62 = vsub.f32 %v1971_v30, %v765_v54  ;;  %v848_v1 = vsub.f32 %v1973_v31, %v765_v54  ;;  %v802_v30 = vmax.f32 %v2070_v45, %v2072_v46  ;;  %1338 = vmatmul.msk.bf16.gmra.mxu0 %vm337_vm0, %v1418_v51  ;;  %1343 = vmatmul.msk.bf16.gmra.mxu1 %vm337_vm0, %v1418_v51 }
 0x2c3   : > { %v2082_v58 = vpop.f32.mrf.mxu2  ;;  %v2084_v59 = vpop.f32.mrf.mxu3 }
 0x2c4   : > { %2485 = vst [vmem:[#allocation22_spill] sm:$0xff] %v2082_v58  ;;  %773 = vmax.xlane.f32.xlu0 %v772_v55  ;;  %v935_v0 = vmul.f32 1.442695, %v847_v62  ;;  %v937_v55 = vmul.f32 1.442695, %v848_v1 }
 0x2c5   : > { %2486 = vst [vmem:[#allocation23_spill] sm:$0xff] %v2084_v59 }
 0x2c6   : > { %1498 = vpow2.f32 %v935_v0  ;;  %v808_v0 = vmax.f32 %v2082_v58, %v2084_v59 }
 0x2c7   : > { %1500 = vpow2.f32 %v937_v55 }
 0x2c9   : > { %v759_v5 = vpop.xlane.xlu1 %758  ;;  %v768_v32 = vpop.xlane.xlu0 %767  ;;  %806 = vmax.xlane.f32.xlu1 %v805_v4 }
 0x2ca   : > { %v849_v63 = vsub.f32 %v1977_v33, %v768_v32  ;;  %v850_v3 = vsub.f32 %v1979_v34, %v768_v32  ;;  %v843_v33 = vsub.f32 %v1961_v26, %v759_v5  ;;  %v844_v34 = vsub.f32 %v1963_v27, %v759_v5 }
 0x2cb   : > { %v2097_v31 = vpop.f32.mrf.mxu2  ;;  %v2099_v54 = vpop.f32.mrf.mxu3 }
 0x2cc   : > { %2487 = vst [vmem:[#allocation24_spill] sm:$0xff] %v2099_v54  ;;  %v939_v4 = vmul.f32 1.442695, %v849_v63  ;;  %803 = vmax.xlane.f32.xlu0 %v802_v30  ;;  %v941_v2 = vmul.f32 1.442695, %v850_v3  ;;  %v811_v62 = vmax.f32 %v2097_v31, %v2099_v54  ;;  %v2115_v5 = vpop.eup %1498  ;;  %v268_v54 = vld [vmem:[%s2453_s2 + $0x40] sm:$0xff] }
 0x2cd   : > { %v927_v42 = vmul.f32 1.442695, %v843_v33  ;;  %v929_v26 = vmul.f32 1.442695, %v844_v34  ;;  %311 = vperm.xlu2 %1497, %v268_v54   ;;  %v778_v54 = vmax.f32 %v2018_v52, %v2020_v53 }
 0x2ce   : > { %1502 = vpow2.f32 %v939_v4 }
 0x2cf   : > { %1504 = vpow2.f32 %v941_v2  ;;  %v2117_v2 = vpop.eup %1500 }
 0x2d0   : > { %1506 = vpow2.f32 %v927_v42 }
 0x2d1   : > { %v753_v1 = vpop.xlane.xlu1 %752  ;;  %v762_v32 = vpop.xlane.xlu0 %761  ;;  %812 = vmax.xlane.f32.xlu1 %v811_v62  ;;  %1508 = vpow2.f32 %v929_v26 }
 0x2d2   : > { %v845_v51 = vsub.f32 %v1965_v28, %v762_v32  ;;  %v846_v63 = vsub.f32 %v1967_v29, %v762_v32  ;;  %v839_v28 = vsub.f32 %v1951_v22, %v753_v1  ;;  %v840_v33 = vsub.f32 %v1953_v23, %v753_v1 }
 0x2d3   : > { %v2111_v3 = vpop.f32.mrf.mxu2  ;;  %v2113_v27 = vpop.f32.mrf.mxu3 }
 0x2d4   : > { %v931_v30 = vmul.f32 1.442695, %v845_v51  ;;  %809 = vmax.xlane.f32.xlu0 %v808_v0  ;;  %v933_v55 = vmul.f32 1.442695, %v846_v63  ;;  %v2119_v4 = vpop.eup %1502  ;;  %v919_v63 = vmul.f32 1.442695, %v839_v28  ;;  %v814_v22 = vmax.f32 %v2111_v3, %v2113_v27 }
 0x2d5   : > { %v2122_v29 = vpop.eup %1504  ;;  %v921_v0 = vmul.f32 1.442695, %v840_v33 }
 0x2d6   : > { %1510 = vpow2.f32 %v931_v30  ;;  %v2137_v30 = vpop.eup %1506 }
 0x2d7   : > { %1512 = vpow2.f32 %v933_v55  ;;  %v2141_v28 = vpop.eup %1508 }
 0x2d8   : > { %1514 = vpow2.f32 %v919_v63 }
 0x2d9   : > { %v747_v32 = vpop.xlane.xlu1 %746  ;;  %v756_v51 = vpop.xlane.xlu0 %755  ;;  %1516 = vpow2.f32 %v921_v0 }
 0x2da   : > { %v841_v42 = vsub.f32 %v1955_v24, %v756_v51  ;;  %v842_v26 = vsub.f32 %v1957_v25, %v756_v51  ;;  %v835_v33 = vsub.f32 %v1941_v18, %v747_v32  ;;  %v836_v51 = vsub.f32 %v1943_v19, %v747_v32 }
 0x2db   : > { %v2133_v23 = vpop.f32.mrf.mxu2  ;;  %v2135_v1 = vpop.f32.mrf.mxu3 }
 0x2dc   : > { %v923_v34 = vmul.f32 1.442695, %v841_v42  ;;  %815 = vmax.xlane.f32.xlu0 %v814_v22  ;;  %v817_v55 = vmax.f32 %v2133_v23, %v2135_v1  ;;  %v925_v24 = vmul.f32 1.442695, %v842_v26  ;;  %v2143_v62 = vpop.eup %1510  ;;  %v911_v46 = vmul.f32 1.442695, %v835_v33 }
 0x2dd   : > { %v2146_v25 = vpop.eup %1512 }
 0x2de   : > { %818 = vmax.xlane.f32.xlu1 %v817_v55  ;;  %1518 = vpow2.f32 %v923_v34  ;;  %v913_v55 = vmul.f32 1.442695, %v836_v51  ;;  %v2159_v19 = vpop.eup %1514 }
 0x2df   : > { %1520 = vpow2.f32 %v925_v24  ;;  %v2163_v22 = vpop.eup %1516 }
 0x2e0   : > { %1522 = vpow2.f32 %v911_v46 }
 0x2e1   : > { %v741_v26 = vpop.xlane.xlu1 %740  ;;  %v750_v41 = vpop.xlane.xlu0 %749  ;;  %1524 = vpow2.f32 %v913_v55 }
 0x2e2   : > { %v837_v63 = vsub.f32 %v1945_v20, %v750_v41  ;;  %v838_v18 = vsub.f32 %v1947_v21, %v750_v41  ;;  %v831_v20 = vsub.f32 %v1931_v14, %v741_v26  ;;  %v832_v41 = vsub.f32 %v1933_v15, %v741_v26 }
 0x2e3   : > { %v2155_v45 = vpop.f32.mrf.mxu2  ;;  %v2157_v0 = vpop.f32.mrf.mxu3 }
 0x2e4   : > { %v915_v32 = vmul.f32 1.442695, %v837_v63  ;;  %v820_v34 = vmax.f32 %v2155_v45, %v2157_v0  ;;  %v917_v24 = vmul.f32 1.442695, %v838_v18  ;;  %v2165_v42 = vpop.eup %1518  ;;  %v903_v50 = vmul.f32 1.442695, %v831_v20 }
 0x2e5   : > { %v2168_v21 = vpop.eup %1520 }
 0x2e6   : > { %821 = vmax.xlane.f32.xlu0 %v820_v34  ;;  %1526 = vpow2.f32 %v915_v32  ;;  %v905_v34 = vmul.f32 1.442695, %v832_v41  ;;  %v2177_v47 = vpop.eup %1522 }
 0x2e7   : > { %1528 = vpow2.f32 %v917_v24  ;;  %v2179_v15 = vpop.eup %1524 }
 0x2e8   : > { %1530 = vpow2.f32 %v903_v50  ;;  %v259_v50 = vld [vmem:[%s2452_s1 + $0x20] sm:$0xf] }
 0x2e9   : > { %v735_v63 = vpop.xlane.xlu1 %734  ;;  %v744_v18 = vpop.xlane.xlu0 %743  ;;  %1532 = vpow2.f32 %v905_v34 }
 0x2ea   : > { %v833_v46 = vsub.f32 %v1935_v16, %v744_v18  ;;  %v834_v14 = vsub.f32 %v1937_v17, %v744_v18  ;;  %v827_v32 = vsub.f32 %v1921_v10, %v735_v63  ;;  %v828_v20 = vsub.f32 %v1923_v11, %v735_v63 }
 0x2eb   : > { %v331_v63 = vunpack.c.l.b16 %v259_v50 }
 0x2ec   : > { %v907_v55 = vmul.f32 1.442695, %v833_v46  ;;  %v909_v26 = vmul.f32 1.442695, %v834_v14  ;;  %v2181_v33 = vpop.eup %1526  ;;  %v895_v10 = vmul.f32 1.442695, %v827_v32 }
 0x2ed   : > { %v2184_v24 = vpop.eup %1528  ;;  %v897_v11 = vmul.f32 1.442695, %v828_v20  ;;  %v336_v59 = vpack.c.b16 %v331_v63, %v331_v63 }
 0x2ee   : > { %1534 = vpow2.f32 %v907_v55  ;;  %v2196_v34 = vpop.eup %1530 }
 0x2ef   : > { %1536 = vpow2.f32 %v909_v26  ;;  %v266_v26 = vld [vmem:[%s2453_s2 + $0x30] sm:$0xff]  ;;  %v2202_v17 = vpop.eup %1532  ;;  %1339 = vmatmul.msk.bf16.gmra.mxu0 %vm337_vm0, %v336_v59  ;;  %1344 = vmatmul.msk.bf16.gmra.mxu1 %vm337_vm0, %v336_v59 }
 0x2f0   : > { %1538 = vpow2.f32 %v895_v10 }
 0x2f1   : > { %v729_v41 = vpop.xlane.xlu1 %728  ;;  %v738_v18 = vpop.xlane.xlu0 %737  ;;  %1540 = vpow2.f32 %v897_v11 }
 0x2f2   : > { %v829_v46 = vsub.f32 %v1925_v12, %v738_v18  ;;  %v830_v14 = vsub.f32 %v1927_v13, %v738_v18  ;;  %v823_v55 = vsub.f32 %v1911_v6, %v729_v41  ;;  %v824_v51 = vsub.f32 %v1913_v7, %v729_v41  ;;  %v267_v6 = vld [vmem:[%s2453_s2 + $0x38] sm:$0xff] }
 0x2f4   : > { %v899_v16 = vmul.f32 1.442695, %v829_v46  ;;  %v901_v32 = vmul.f32 1.442695, %v830_v14  ;;  %v2205_v12 = vpop.eup %1534  ;;  %v887_v18 = vmul.f32 1.442695, %v823_v55 }
 0x2f5   : > { %v2207_v13 = vpop.eup %1536  ;;  %v889_v41 = vmul.f32 1.442695, %v824_v51  ;;  %v372_v51 = vpop.f32.mrf.mxu0 }
 0x2f6   : > { %1542 = vpow2.f32 %v899_v16  ;;  %v2220_v14 = vpop.eup %1538 }
 0x2f7   : > { %301 = vperm.xlu1 %1496, %v266_v26   ;;  %1544 = vpow2.f32 %v901_v32  ;;  %v2222_v55 = vpop.eup %1540 }
 0x2f8   : > { %1546 = vpow2.f32 %v887_v18  ;;  %2488 = vst [vmem:[#allocation25_spill] sm:$0xff] %v2222_v55 }
 0x2f9   : > { %v732_v50 = vpop.xlane.xlu0 %731  ;;  %1548 = vpow2.f32 %v889_v41 }
 0x2fa   : > { %v825_v10 = vsub.f32 %v1915_v8, %v732_v50  ;;  %v826_v46 = vsub.f32 %v1917_v9, %v732_v50  ;;  %306 = vperm.xlu0 %1495, %v267_v6   ;;  %v405_v9 = vpop.f32.mrf.mxu1 }
 0x2fc   : > { %v891_v11 = vmul.f32 1.442695, %v825_v10  ;;  %v893_v63 = vmul.f32 1.442695, %v826_v46  ;;  %v2224_v59 = vpop.eup %1542  ;;  %v796_v10 = vmax.f32 %v2062_v37, %v2064_v40 }
 0x2fd   : > { %v2226_v16 = vpop.eup %1544  ;;  %v374_v8 = vpop.f32.mrf.mxu0 }
 0x2fe   : > { %1550 = vpow2.f32 %v891_v11  ;;  %2489 = vst [vmem:[#allocation26_spill] sm:$0xff] %v2226_v16  ;;  %v2232_v32 = vpop.eup %1546 }
 0x2ff   : > { %1552 = vpow2.f32 %v893_v63  ;;  %v2234_v6 = vpop.eup %1548 }
 0x302   : > { %v407_v7 = vpop.f32.mrf.mxu1 }
 0x304   : > { %v2236_v18 = vpop.eup %1550 }
 0x305   : > { %v2238_v41 = vpop.eup %1552 }
 0x309   : > { %v292_v46 = vpop.permute.xlu1 %291 }
 0x30a   : > { %v373_v11 = vadd.f32 %v372_v51, %v292_v46  ;;  %v406_v63 = vadd.f32 %v405_v9, %v292_v46  ;;  %v793_v51 = vmax.f32 %v2058_v35, %v2060_v36 }
 0x30c   : > { %v427_v26 = vpack.c.bf16 %v406_v63, %v373_v11  ;;  %v297_v20 = vpop.permute.xlu0 %296 }
 0x30d   : > { %v375_v58 = vadd.f32 %v374_v8, %v297_v20  ;;  %v408_v55 = vadd.f32 %v407_v7, %v297_v20  ;;  %v784_v8 = vmax.f32 %v2034_v60, %v2036_v61  ;;  %v771_v20 = vpop.xlane.xlu2 %770 }
 0x30e   : > { %432 = vst [vmem:[#allocation4] sm:$0xff] %v427_v26  ;;  %v851_v7 = vsub.f32 %v1987_v38, %v771_v20 }
 0x30f   : > { %v428_v16 = vpack.c.bf16 %v408_v55, %v375_v58  ;;  %v781_v58 = vmax.f32 %v2026_v56, %v2028_v57  ;;  %v775_v55 = vmax.f32 %v2010_v48, %v2012_v49 }
 0x310   : > { %v943_v9 = vmul.f32 1.442695, %v851_v7 }
 0x311   : > { %433 = vst [vmem:[#allocation4 + $0x8] sm:$0xff] %v428_v16  ;;  %v852_v16 = vsub.f32 %v1989_v39, %v771_v20 }
 0x312   : > { %1554 = vpow2.f32 %v943_v9  ;;  %v2492_v9 = vpack.c.bf16 %v2143_v62, %v2137_v30  ;;  %v2496_v62 = vpack.c.bf16 %v2181_v33, %v2177_v47 }
 0x313   : > { %v945_v26 = vmul.f32 1.442695, %v852_v16 }
 0x315   : > { %1556 = vpow2.f32 %v945_v26  ;;  %v2292_v30 = vpop.xlane.xlu2 %788 }
 0x318   : > { %v1555_v38 = vpop.eup %1554 }
 0x321   : > { %797 = vmax.xlane.f32.xlu1 %v796_v10 }
 0x324   : > { %794 = vmax.xlane.f32.xlu0 %v793_v51 }
 0x329   : > { %785 = vmax.xlane.f32.xlu1 %v784_v8  ;;  %v1557_v8 = vpop.eup %1556 }
 0x32c   : > { %782 = vmax.xlane.f32.xlu0 %v781_v58 }
 0x331   : > { %779 = vmax.xlane.f32.xlu1 %v778_v54 }
 0x334   : > { %776 = vmax.xlane.f32.xlu0 %v775_v55  ;;  %v2263_v20 = vpop.xlane.xlu1 %800 }
 0x337   : > { %v774_v10 = vpop.xlane.xlu0 %773 }
 0x338   : > { %v853_v46 = vsub.f32 %v1997_v43, %v774_v10  ;;  %v854_v11 = vsub.f32 %v1999_v44, %v774_v10  ;;  %v2490_v43 = vpack.c.bf16 %v2119_v4, %v2115_v5  ;;  %v2491_v44 = vpack.c.bf16 %v2122_v29, %v2117_v2 }
 0x339   : > { %v2494_v5 = vpack.c.bf16 %v2165_v42, %v2159_v19  ;;  %v2495_v2 = vpack.c.bf16 %v2168_v21, %v2163_v22 }
 0x33a   : > { %v947_v63 = vmul.f32 1.442695, %v853_v46  ;;  %v949_v51 = vmul.f32 1.442695, %v854_v11 }
 0x33c   : > { %1558 = vpow2.f32 %v947_v63  ;;  %v2273_v55 = vpop.xlane.xlu1 %806 }
 0x33d   : > { %1560 = vpow2.f32 %v949_v51 }
 0x33f   : > { %v2265_v7 = vpop.xlane.xlu0 %803  ;;  %v377_v4 = vpop.f32.mrf.mxu0 }
 0x340   : > { %v410_v29 = vpop.f32.mrf.mxu1 }
 0x342   : > { %v1559_v58 = vpop.eup %1558 }
 0x343   : > { %v1561_v54 = vpop.eup %1560  ;;  %v1029_v50 = vpack.c.bf16 %v1559_v58, %v1555_v38 }
 0x344   : > { %v1030_v39 = vpack.c.bf16 %v1561_v54, %v1557_v8  ;;  %v813_v26 = vpop.xlane.xlu1 %812  ;;  %v2498_v54 = vpack.c.bf16 %v2205_v12, %v2196_v34 }
 0x345   : > { %1079 = vmatpush.bf16.xpose.msrb.mxu0 %v1029_v50  ;;  %v2493_v50 = vpack.c.bf16 %v2146_v25, %v2141_v28  ;;  %v2497_v28 = vpack.c.bf16 %v2184_v24, %v2179_v15  ;;  %v2499_v24 = vpack.c.bf16 %v2207_v13, %v2202_v17  ;;  %v879_v12 = vsub.f32 %v2097_v31, %v813_v26 }
 0x346   : > { %1102 = vmatpush.bf16.xpose.msrb.mxu1 %v1030_v39  ;;  %v2500_v17 = vpack.c.bf16 %v2224_v59, %v2220_v14  ;;  %v2505_v14 = vld [vmem:[#allocation22_spill] sm:$0xff] }
 0x347   : > { %v2275_v16 = vpop.xlane.xlu0 %809  ;;  %v379_v63 = vpop.f32.mrf.mxu0 }
 0x348   : > { %v412_v22 = vpop.f32.mrf.mxu1  ;;  %v877_v59 = vsub.f32 %v2505_v14, %v2275_v16 }
 0x34d   : > { %1080 = vmatpush.bf16.xpose.msrb.mxu0 %v2490_v43 }
 0x34e   : > { %1103 = vmatpush.bf16.xpose.msrb.mxu1 %v2491_v44 }
 0x34f   : > { %v816_v10 = vpop.xlane.xlu0 %815 }
 0x350   : > { %v882_v34 = vsub.f32 %v2113_v27, %v816_v10 }
 0x351   : > { %v819_v46 = vpop.xlane.xlu1 %818 }
 0x352   : > { %v883_v47 = vsub.f32 %v2133_v23, %v819_v46  ;;  %v884_v15 = vsub.f32 %v2135_v1, %v819_v46  ;;  %v1005_v46 = vmul.f32 1.442695, %v882_v34 }
 0x354   : > { %v1007_v44 = vmul.f32 1.442695, %v883_v47  ;;  %v1009_v23 = vmul.f32 1.442695, %v884_v15  ;;  %v2508_v47 = vpack.c.bf16 %v2236_v18, %v2232_v32  ;;  %v1395_v32 = vld [vmem:[#allocation4] sm:$0xf] }
 0x355   : > { %1081 = vmatpush.bf16.xpose.msrb.mxu0 %v2492_v9  ;;  %v881_v9 = vsub.f32 %v2111_v3, %v816_v10 }
 0x356   : > { %1104 = vmatpush.bf16.xpose.msrb.mxu1 %v2493_v50  ;;  %v2501_v50 = vld [vmem:[#allocation24_spill] sm:$0xff] }
 0x357   : > { %v1003_v3 = vmul.f32 1.442695, %v881_v9 }
 0x359   : > { %v822_v11 = vpop.xlane.xlu0 %821 }
 0x35a   : > { %v885_v21 = vsub.f32 %v2155_v45, %v822_v11  ;;  %v886_v51 = vsub.f32 %v2157_v0, %v822_v11  ;;  %v2307_v0 = vpop.xlane.xlu2 %791  ;;  %v999_v11 = vmul.f32 1.442695, %v879_v12  ;;  %v2511_v12 = vld [vmem:[#allocation18_spill] sm:$0xff] }
 0x35c   : > { %v1011_v45 = vmul.f32 1.442695, %v885_v21  ;;  %v1013_v43 = vmul.f32 1.442695, %v886_v51 }
 0x35d   : > { %1082 = vmatpush.bf16.xpose.msrb.mxu0 %v2494_v5  ;;  %v880_v5 = vsub.f32 %v2501_v50, %v813_v26 }
 0x35e   : > { %1105 = vmatpush.bf16.xpose.msrb.mxu1 %v2495_v2  ;;  %1562 = vpow2.f32 %v1011_v45  ;;  %v2502_v2 = vld [vmem:[#allocation26_spill] sm:$0xff]  ;;  %v1424_v45 = vld [vmem:[#allocation4 + $0x4] sm:$0xf0] }
 0x35f   : > { %1564 = vpow2.f32 %v1013_v43  ;;  %v1397_v43 = vld [vmem:[#allocation4 + $0x8] sm:$0xf0]  ;;  %v2335_v34 = vor.u32 %v1424_v45, %v1395_v32 }
 0x360   : > { %1566 = vpow2.f32 %v1007_v44 }
 0x361   : > { %1568 = vpow2.f32 %v1009_v23 }
 0x362   : > { %v312_v27 = vpop.permute.xlu2 %311  ;;  %1570 = vpow2.f32 %v1003_v3  ;;  %v2514_v3 = vld [vmem:[#allocation17_spill] sm:$0xff] }
 0x363   : > { %1572 = vpow2.f32 %v1005_v46  ;;  %v872_v46 = vsub.f32 %v2514_v3, %v2263_v20 }
 0x364   : > { %v1563_v10 = vpop.eup %1562  ;;  %1574 = vpow2.f32 %v999_v11 }
 0x365   : > { %1083 = vmatpush.bf16.xpose.msrb.mxu0 %v2496_v62 }
 0x366   : > { %1106 = vmatpush.bf16.xpose.msrb.mxu1 %v2497_v28  ;;  %v1565_v28 = vpop.eup %1564 }
 0x369   : > { %v302_v25 = vpop.permute.xlu1 %301 }
 0x36a   : > { %v378_v42 = vadd.f32 %v377_v4, %v302_v25  ;;  %v411_v19 = vadd.f32 %v410_v29, %v302_v25  ;;  %v2503_v4 = vld [vmem:[#allocation25_spill] sm:$0xff]  ;;  %v1001_v25 = vmul.f32 1.442695, %v880_v5 }
 0x36b   : > { %v2504_v29 = vpack.c.bf16 %v2502_v2, %v2503_v4  ;;  %v2513_v2 = vld [vmem:[#allocation16_spill] sm:$0xff] }
 0x36c   : > { %v429_v38 = vpack.c.bf16 %v411_v19, %v378_v42  ;;  %v307_v8 = vpop.permute.xlu0 %306  ;;  %v382_v1 = vpop.f32.mrf.mxu0  ;;  %1576 = vpow2.f32 %v1001_v25  ;;  %v871_v4 = vsub.f32 %v2513_v2, %v2263_v20 }
 0x36d   : > { %v380_v33 = vadd.f32 %v379_v63, %v307_v8  ;;  %v413_v58 = vadd.f32 %v412_v22, %v307_v8  ;;  %1084 = vmatpush.bf16.xpose.msrb.mxu0 %v2498_v54  ;;  %v415_v13 = vpop.f32.mrf.mxu1  ;;  %v383_v62 = vadd.f32 %v382_v1, %v312_v27  ;;  %v1567_v42 = vpop.eup %1566  ;;  %v2506_v63 = vld [vmem:[#allocation23_spill] sm:$0xff]  ;;  %v2509_v54 = vld [vmem:[#allocation21_spill] sm:$0xff] }
 0x36e   : > { %434 = vst [vmem:[#allocation4 + $0x10] sm:$0xff] %v429_v38  ;;  %1107 = vmatpush.bf16.xpose.msrb.mxu1 %v2499_v24  ;;  %v416_v31 = vadd.f32 %v415_v13, %v312_v27  ;;  %v1569_v19 = vpop.eup %1568  ;;  %v878_v22 = vsub.f32 %v2506_v63, %v2275_v16  ;;  %v1045_v21 = vpack.c.bf16 %v1563_v10, %v1567_v42  ;;  %v2507_v38 = vld [vmem:[#allocation20_spill] sm:$0xff]  ;;  %v995_v24 = vmul.f32 1.442695, %v877_v59  ;;  %v1423_v1 = vld [vmem:[#allocation4 + $0x4] sm:$0xf] }
 0x36f   : > { %v430_v39 = vpack.c.bf16 %v413_v58, %v380_v33  ;;  %v875_v8 = vsub.f32 %v2507_v38, %v2273_v55  ;;  %v1046_v33 = vpack.c.bf16 %v1565_v28, %v1569_v19  ;;  %v876_v15 = vsub.f32 %v2509_v54, %v2273_v55  ;;  %v1571_v44 = vpop.eup %1570  ;;  %v2512_v13 = vld [vmem:[#allocation19_spill] sm:$0xff] }
 0x370   : > { %v2321_v26 = vpack.c.bf16 %v416_v31, %v383_v62  ;;  %v2510_v16 = vpack.c.bf16 %v2238_v41, %v2234_v6  ;;  %v1573_v18 = vpop.eup %1572  ;;  %1578 = vpow2.f32 %v995_v24  ;;  %v2339_v6 = vor.u32 %v1423_v1, %v1397_v43  ;;  %v2517_v1 = vld [vmem:[#allocation12_spill] sm:$0xff] }
 0x371   : > { %435 = vst [vmem:[#allocation4 + $0x18] sm:$0xff] %v430_v39  ;;  %v997_v39 = vmul.f32 1.442695, %v878_v22  ;;  %v991_v23 = vmul.f32 1.442695, %v875_v8  ;;  %v1575_v55 = vpop.eup %1574  ;;  %v874_v50 = vsub.f32 %v2512_v13, %v2265_v7 }
 0x372   : > { %v993_v9 = vmul.f32 1.442695, %v876_v15  ;;  %v1577_v41 = vpop.eup %1576  ;;  %v1043_v5 = vpack.c.bf16 %v1571_v44, %v1575_v55  ;;  %v983_v11 = vmul.f32 1.442695, %v871_v4  ;;  %v985_v31 = vmul.f32 1.442695, %v872_v46 }
 0x373   : > { %1580 = vpow2.f32 %v997_v39  ;;  %v989_v10 = vmul.f32 1.442695, %v874_v50  ;;  %v863_v55 = vsub.f32 %v2517_v1, %v2292_v30 }
 0x374   : > { %v384_v51 = vpop.f32.mrf.mxu0  ;;  %1582 = vpow2.f32 %v991_v23  ;;  %v2515_v23 = vld [vmem:[#allocation14_spill] sm:$0xff] }
 0x375   : > { %1085 = vmatpush.bf16.xpose.msrb.mxu0 %v2500_v17  ;;  %v417_v58 = vpop.f32.mrf.mxu1  ;;  %v873_v17 = vsub.f32 %v2511_v12, %v2265_v7  ;;  %1584 = vpow2.f32 %v993_v9  ;;  %v1403_v63 = vld [vmem:[#allocation4 + $0x10] sm:$0xf]  ;;  %v1425_v51 = vld [vmem:[#allocation4 + $0x14] sm:$0xf]  ;;  %v865_v32 = vsub.f32 %v2515_v23, %v2307_v0  ;;  %v1065_v12 = vunpack.c.l.b16 %v2321_v26 }
 0x376   : > { %1108 = vmatpush.bf16.xpose.msrb.mxu1 %v2504_v29  ;;  %v1044_v29 = vpack.c.bf16 %v1573_v18, %v1577_v41  ;;  %v1579_v7 = vpop.eup %1578  ;;  %v967_v4 = vmul.f32 1.442695, %v863_v55 }
 0x377   : > { %v987_v27 = vmul.f32 1.442695, %v873_v17  ;;  %v971_v41 = vmul.f32 1.442695, %v865_v32 }
 0x378   : > { %v1426_v20 = vld [vmem:[#allocation4 + $0x14] sm:$0xf0]  ;;  %v1405_v59 = vld [vmem:[#allocation4 + $0x18] sm:$0xf0] }
 0x379   : > { %v1581_v62 = vpop.eup %1580  ;;  %1586 = vpow2.f32 %v987_v27  ;;  %v2351_v8 = vor.u32 %v1425_v51, %v1405_v59 }
 0x37a   : > { %v1583_v28 = vpop.eup %1582  ;;  %1588 = vpow2.f32 %v989_v10 }
 0x37b   : > { %v1585_v25 = vpop.eup %1584  ;;  %v1041_v42 = vpack.c.bf16 %v1579_v7, %v1583_v28  ;;  %1590 = vpow2.f32 %v983_v11 }
 0x37c   : > { %v1042_v14 = vpack.c.bf16 %v1581_v62, %v1585_v25  ;;  %1592 = vpow2.f32 %v985_v31 }
 0x37d   : > { %1086 = vmatpush.bf16.xpose.msrb.mxu0 %v2508_v47 }
 0x37e   : > { %1109 = vmatpush.bf16.xpose.msrb.mxu1 %v2510_v16 }
 0x37f   : > { %v1587_v19 = vpop.eup %1586 }
 0x380   : > { %v1589_v22 = vpop.eup %1588 }
 0x381   : > { %v1591_v38 = vpop.eup %1590 }
 0x382   : > { %v1593_v47 = vpop.eup %1592  ;;  %v1039_v58 = vpack.c.bf16 %v1587_v19, %v1591_v38 }
 0x383   : > { %v1040_v16 = vpack.c.bf16 %v1589_v22, %v1593_v47 }
 0x384   : > { %1087 = vmatmul.bf16.vlgmr.msrb.gmra.mxu0 %v2335_v34 }
 0x385   : > { %1125 = vmatpush.bf16.xpose.msra.mxu0 %v1045_v21  ;;  %1110 = vmatmul.bf16.vlgmr.msrb.gmra.mxu1 %v2339_v6  ;;  %v2349_v21 = vor.u32 %v1426_v20, %v1403_v63 }
 0x386   : > { %1148 = vmatpush.bf16.xpose.msra.mxu1 %v1046_v33 }
 0x38d   : > { %1126 = vmatpush.bf16.xpose.msra.mxu0 %v1043_v5 }
 0x38e   : > { %1149 = vmatpush.bf16.xpose.msra.mxu1 %v1044_v29 }
 0x394   : > { %v798_v33 = vpop.xlane.xlu1 %797  ;;  %1092 = vmatmul.bf16.gmra.mxu0 %v2349_v21 }
 0x395   : > { %1127 = vmatpush.bf16.xpose.msra.mxu0 %v1041_v42  ;;  %v869_v54 = vsub.f32 %v2062_v37, %v798_v33  ;;  %v870_v15 = vsub.f32 %v2064_v40, %v798_v33  ;;  %1115 = vmatmul.bf16.gmra.mxu1 %v2351_v8  ;;  %v2516_v40 = vld [vmem:[#allocation15_spill] sm:$0xff] }
 0x396   : > { %1150 = vmatpush.bf16.xpose.msra.mxu1 %v1042_v14  ;;  %v866_v9 = vsub.f32 %v2516_v40, %v2307_v0  ;;  %v2369_v0 = vpack.c.b16 %v1065_v12, %v1065_v12 }
 0x397   : > { %v979_v24 = vmul.f32 1.442695, %v869_v54  ;;  %v981_v45 = vmul.f32 1.442695, %v870_v15  ;;  %v795_v39 = vpop.xlane.xlu0 %794 }
 0x398   : > { %v867_v43 = vsub.f32 %v2058_v35, %v795_v39  ;;  %v868_v44 = vsub.f32 %v2060_v36, %v795_v39  ;;  %v2518_v35 = vld [vmem:[#allocation13_spill] sm:$0xff]  ;;  %v1066_v36 = vunpack.c.h.b16 %v2321_v26  ;;  %v973_v13 = vmul.f32 1.442695, %v866_v9 }
 0x399   : > { %1594 = vpow2.f32 %v979_v24  ;;  %v864_v17 = vsub.f32 %v2518_v35, %v2292_v30 }
 0x39a   : > { %v975_v18 = vmul.f32 1.442695, %v867_v43  ;;  %v977_v37 = vmul.f32 1.442695, %v868_v44  ;;  %1596 = vpow2.f32 %v981_v45  ;;  %v2371_v46 = vpack.c.b16 %v1066_v36, %v1066_v36 }
 0x39b   : > { %v969_v3 = vmul.f32 1.442695, %v864_v17 }
 0x39c   : > { %1598 = vpow2.f32 %v975_v18  ;;  %v786_v50 = vpop.xlane.xlu1 %785 }
 0x39d   : > { %1128 = vmatpush.bf16.xpose.msra.mxu0 %v1039_v58  ;;  %1600 = vpow2.f32 %v977_v37  ;;  %v861_v11 = vsub.f32 %v2034_v60, %v786_v50  ;;  %v862_v31 = vsub.f32 %v2036_v61, %v786_v50 }
 0x39e   : > { %1151 = vmatpush.bf16.xpose.msra.mxu1 %v1040_v16  ;;  %1602 = vpow2.f32 %v971_v41 }
 0x39f   : > { %v783_v5 = vpop.xlane.xlu0 %782  ;;  %v1595_v2 = vpop.eup %1594  ;;  %1604 = vpow2.f32 %v973_v13  ;;  %v963_v14 = vmul.f32 1.442695, %v861_v11  ;;  %v965_v20 = vmul.f32 1.442695, %v862_v31 }
 0x3a0   : > { %v1597_v29 = vpop.eup %1596  ;;  %v859_v10 = vsub.f32 %v2026_v56, %v783_v5  ;;  %v860_v26 = vsub.f32 %v2028_v57, %v783_v5  ;;  %1606 = vpow2.f32 %v967_v4 }
 0x3a1   : > { %1608 = vpow2.f32 %v969_v3  ;;  %v448_v3 = vld [vmem:[%s1857_s26 + $0x10] sm:$0xff] }
 0x3a2   : > { %v1599_v27 = vpop.eup %1598  ;;  %v959_v28 = vmul.f32 1.442695, %v859_v10  ;;  %v961_v56 = vmul.f32 1.442695, %v860_v26 }
 0x3a3   : > { %v1601_v30 = vpop.eup %1600  ;;  %v1037_v7 = vpack.c.bf16 %v1595_v2, %v1599_v27  ;;  %v452_v27 = vld [vmem:[%s1857_s26 + $0x30] sm:$0xff] }
 0x3a4   : > { %1097 = vmatmul.bf16.gmra.mxu0 %v2369_v0  ;;  %v1038_v62 = vpack.c.bf16 %v1597_v29, %v1601_v30  ;;  %v1603_v42 = vpop.eup %1602  ;;  %v780_v59 = vpop.xlane.xlu1 %779  ;;  %1610 = vpow2.f32 %v959_v28  ;;  %v446_v29 = vld [vmem:[%s1857_s26] sm:$0xff] }
 0x3a5   : > { %1120 = vmatmul.bf16.gmra.mxu1 %v2371_v46  ;;  %1129 = vmatpush.bf16.xpose.msra.mxu0 %v1037_v7  ;;  %v1605_v57 = vpop.eup %1604  ;;  %1612 = vpow2.f32 %v961_v56  ;;  %v857_v51 = vsub.f32 %v2018_v52, %v780_v59  ;;  %v858_v47 = vsub.f32 %v2020_v53, %v780_v59 }
 0x3a6   : > { %1152 = vmatpush.bf16.xpose.msra.mxu1 %v1038_v62  ;;  %v1607_v19 = vpop.eup %1606  ;;  %1614 = vpow2.f32 %v963_v14 }
 0x3a7   : > { %v777_v25 = vpop.xlane.xlu0 %776  ;;  %v1609_v63 = vpop.eup %1608  ;;  %v1035_v22 = vpack.c.bf16 %v1603_v42, %v1607_v19  ;;  %1616 = vpow2.f32 %v965_v20  ;;  %v955_v15 = vmul.f32 1.442695, %v857_v51 }
 0x3a8   : > { %v855_v60 = vsub.f32 %v2010_v48, %v777_v25  ;;  %v856_v61 = vsub.f32 %v2012_v49, %v777_v25  ;;  %v1036_v38 = vpack.c.bf16 %v1605_v57, %v1609_v63  ;;  %v957_v48 = vmul.f32 1.442695, %v858_v47 }
 0x3aa   : > { %v951_v33 = vmul.f32 1.442695, %v855_v60  ;;  %v953_v58 = vmul.f32 1.442695, %v856_v61  ;;  %v1611_v54 = vpop.eup %1610 }
 0x3ab   : > { %v1613_v16 = vpop.eup %1612 }
 0x3ac   : > { %v1615_v24 = vpop.eup %1614  ;;  %1618 = vpow2.f32 %v951_v33 }
 0x3ad   : > { %1130 = vmatpush.bf16.xpose.msra.mxu0 %v1035_v22  ;;  %v1617_v45 = vpop.eup %1616  ;;  %1620 = vpow2.f32 %v953_v58  ;;  %v1033_v49 = vpack.c.bf16 %v1615_v24, %v1611_v54  ;;  %v449_v24 = vld [vmem:[%s1857_s26 + $0x18] sm:$0xff] }
 0x3ae   : > { %1153 = vmatpush.bf16.xpose.msra.mxu1 %v1036_v38  ;;  %1622 = vpow2.f32 %v955_v15  ;;  %v1034_v39 = vpack.c.bf16 %v1617_v45, %v1613_v16  ;;  %v451_v45 = vld [vmem:[%s1857_s26 + $0x28] sm:$0xff] }
 0x3af   : > { %1624 = vpow2.f32 %v957_v48  ;;  %v447_v48 = vld [vmem:[%s1857_s26 + $0x8] sm:$0xff] }
 0x3b2   : > { %v1619_v52 = vpop.eup %1618 }
 0x3b3   : > { %v1621_v53 = vpop.eup %1620 }
 0x3b4   : > { %v1623_v43 = vpop.eup %1622 }
 0x3b5   : > { %1131 = vmatpush.bf16.xpose.msra.mxu0 %v1033_v49  ;;  %v1625_v44 = vpop.eup %1624  ;;  %v1031_v23 = vpack.c.bf16 %v1623_v43, %v1619_v52  ;;  %v453_v49 = vld [vmem:[%s1857_s26 + $0x38] sm:$0xff] }
 0x3b6   : > { %1154 = vmatpush.bf16.xpose.msra.mxu1 %v1034_v39  ;;  %v1032_v32 = vpack.c.bf16 %v1625_v44, %v1621_v53 }
 0x3bd   : > { %1132 = vmatpush.bf16.xpose.msra.mxu0 %v1031_v23 }
 0x3be   : > { %1155 = vmatpush.bf16.xpose.msra.mxu1 %v1032_v32 }
 0x3c4   : > { %1133 = vmatmul.bf16.vlgmr.msra.gmra.mxu0 %v2335_v34 }
 0x3c5   : > { %1156 = vmatmul.bf16.vlgmr.msra.gmra.mxu1 %v2339_v6 }
 0x3d4   : > { %1138 = vmatmul.bf16.gmra.mxu0 %v2349_v21 }
 0x3d5   : > { %1161 = vmatmul.bf16.gmra.mxu1 %v2351_v8  ;;  %v1174_v8 = vstv %s2389_s28 }
 0x3e4   : > { %1143 = vmatmul.bf16.gmra.mxu0 %v2369_v0 }
 0x3e5   : > { %1166 = vmatmul.bf16.gmra.mxu1 %v2371_v46  ;;  %v450_v46 = vld [vmem:[%s1857_s26 + $0x20] sm:$0xff]  ;;  %s1204_s26 = scalar_lea.sflag [#allocation8], %s1851_s23 }
 0x401   : > { %v1088_v18 = vpop.f32.mrf.mxu0 }
 0x402   : > { %v1111_v37 = vpop.f32.mrf.mxu1 }
 0x403   : > { %v1112_v50 = vadd.f32 %v1111_v37, %v1088_v18 }
 0x409   : > { %v1090_v40 = vpop.f32.mrf.mxu0 }
 0x40a   : > { %v1113_v9 = vpop.f32.mrf.mxu1 }
 0x40b   : > { %v1114_v5 = vadd.f32 %v1113_v9, %v1090_v40 }
 0x411   : > { %v1093_v1 = vpop.f32.mrf.mxu0 }
 0x412   : > { %v1116_v55 = vpop.f32.mrf.mxu1 }
 0x413   : > { %v1117_v2 = vadd.f32 %v1116_v55, %v1093_v1 }
 0x419   : > { %v1095_v12 = vpop.f32.mrf.mxu0 }
 0x41a   : > { %v1118_v35 = vpop.f32.mrf.mxu1 }
 0x41b   : > { %v1119_v4 = vadd.f32 %v1118_v35, %v1095_v12 }
 0x421   : > { %v1098_v34 = vpop.f32.mrf.mxu0 }
 0x422   : > { %v1121_v6 = vpop.f32.mrf.mxu1 }
 0x423   : > { %v1122_v21 = vadd.f32 %v1121_v6, %v1098_v34 }
 0x425   : > { %1626 = vrcp.f32 %v1122_v21 }
 0x429   : > { %v1100_v17 = vpop.f32.mrf.mxu0 }
 0x42a   : > { %v1123_v36 = vpop.f32.mrf.mxu1 }
 0x42b   : > { %v1627_v41 = vpop.eup %1626 }
 0x42c   : > { %v1175_v13 = vmul.f32 %v1627_v41, %v1174_v8 }
 0x42e   : > { %v1177_v0 = vperm.slane %v1175_v13, 0 }
 0x430   : > { %v1179_v10 = vmul.f32 %v1177_v0, %v1112_v50  ;;  %v1181_v30 = vmul.f32 %v1177_v0, %v1114_v5  ;;  %v1183_v26 = vmul.f32 %v1177_v0, %v1117_v2  ;;  %v1185_v7 = vmul.f32 %v1177_v0, %v1119_v4 }
 0x432   : > { %v1187_v11 = vadd.f32 %v1179_v10, %v446_v29  ;;  %v1189_v62 = vadd.f32 %v1181_v30, %v448_v3  ;;  %v1191_v31 = vadd.f32 %v1183_v26, %v450_v46  ;;  %v1193_v28 = vadd.f32 %v1185_v7, %v452_v27 }
 0x434   : > { %1195 = vst [vmem:[%s2398_s6] sm:$0xff] %v1187_v11 }
 0x435   : > { %1197 = vst [vmem:[%s2398_s6 + $0x10] sm:$0xff] %v1189_v62 }
 0x436   : > { %1199 = vst [vmem:[%s2398_s6 + $0x20] sm:$0xff] %v1191_v31 }
 0x437   : > { %1201 = vst [vmem:[%s2398_s6 + $0x30] sm:$0xff] %v1193_v28 }
 0x441   : > { %v1134_v56 = vpop.f32.mrf.mxu0 }
 0x442   : > { %v1157_v25 = vpop.f32.mrf.mxu1 }
 0x443   : > { %v1158_v33 = vadd.f32 %v1157_v25, %v1134_v56 }
 0x449   : > { %v1136_v42 = vpop.f32.mrf.mxu0 }
 0x44a   : > { %v1159_v14 = vpop.f32.mrf.mxu1 }
 0x44b   : > { %v1160_v58 = vadd.f32 %v1159_v14, %v1136_v42 }
 0x451   : > { %v1139_v57 = vpop.f32.mrf.mxu0 }
 0x452   : > { %v1162_v20 = vpop.f32.mrf.mxu1 }
 0x453   : > { %v1163_v54 = vadd.f32 %v1162_v20, %v1139_v57 }
 0x459   : > { %v1141_v59 = vpop.f32.mrf.mxu0 }
 0x45a   : > { %v1164_v19 = vpop.f32.mrf.mxu1 }
 0x45b   : > { %v1165_v15 = vadd.f32 %v1164_v19, %v1141_v59 }
 0x461   : > { %v1144_v60 = vpop.f32.mrf.mxu0 }
 0x462   : > { %v1167_v63 = vpop.f32.mrf.mxu1 }
 0x463   : > { %v1168_v61 = vadd.f32 %v1167_v63, %v1144_v60 }
 0x465   : > { %1628 = vrcp.f32 %v1168_v61 }
 0x469   : > { %v1146_v22 = vpop.f32.mrf.mxu0 }
 0x46a   : > { %v1169_v51 = vpop.f32.mrf.mxu1 }
 0x46b   : > { %v1629_v38 = vpop.eup %1628 }
 0x46c   : > { %v1176_v47 = vmul.f32 %v1629_v38, %v1174_v8 }
 0x46e   : > { %v1178_v16 = vperm.slane %v1176_v47, 0 }
 0x470   : > { %v1180_v39 = vmul.f32 %v1178_v16, %v1158_v33  ;;  %v1182_v52 = vmul.f32 %v1178_v16, %v1160_v58  ;;  %v1184_v53 = vmul.f32 %v1178_v16, %v1163_v54  ;;  %v1186_v43 = vmul.f32 %v1178_v16, %v1165_v15 }
 0x472   : > { %v1188_v44 = vadd.f32 %v1180_v39, %v447_v48  ;;  %v1190_v23 = vadd.f32 %v1182_v52, %v449_v24  ;;  %v1192_v32 = vadd.f32 %v1184_v53, %v451_v45  ;;  %v1194_v18 = vadd.f32 %v1186_v43, %v453_v49 }
 0x474   : > { %1196 = vst [vmem:[%s2398_s6 + $0x8] sm:$0xff] %v1188_v44 }
 0x475   : > { %1198 = vst [vmem:[%s2398_s6 + $0x18] sm:$0xff] %v1190_v23 }
 0x476   : > { %1200 = vst [vmem:[%s2398_s6 + $0x28] sm:$0xff] %v1192_v32 }
 0x477   : > { %1202 = vst [vmem:[%s2398_s6 + $0x38] sm:$0xff] %v1194_v18 }
 0x478   : > { %1687 = shalt.err (!%p1684_p13)
}
 0x479   : > { %s1747_s23 = smov 256   ;;  %s1748_s27 = smov 16  }
 0x47a   : > { %1430 = dma.vmem_to_hbm [thread:$0]  (%p1828_p9), %s1219_s20, 1024, %s1221_s10, %s1204_s26, %s1747_s23, %s1747_s23, %s1748_s27  }
 0x47b PF: > { %s1235_s28 = sand.u32 1, %s1722_s17   ;;  %p1437_p0 = pnand %p1312_p12, %p1835_p11 }
 0x47c   : > { %s1236_s6 = scalar_lea.sflag [#allocation8], %s1235_s28 }
 0x47d   : > { %p1438_p1 = pneg %p1437_p0 }
 0x47f   : > { %1717 = dma.done.wait (%p1438_p1), %s1236_s6, 1024  }
 0x480   : > { %1719 = vsyncadd (%p1438_p1), %s1236_s6, 4294966272  ;;  %s21_s22 = sadd.s32 1, %s1742_s22   ;;  %s2519_s17 = smov %s1726_s18 }
 0x481   : > { %p18_p2 = scmp.ge.s32.totalorder %s21_s22, 4   ;;  %s2520_s18 = smov %s1730_s19 }
 0x482   : > { %s2521_s19 = smov %s1833_s30  ;;  %s2522_s20 = smov %s1738_s21 }
 0x483   : > { %s2523_s21 = smov %s2525_s24  ;;  %20 = sbr.rel (!%p18_p2) target bundleno = 8 (0x8), region = 87 }
 0x488   :  { %1242 = vsyncpa [#allocation7], 1 }
 0x489   :  { %1244 = vsyncpa [#allocation7 + $0x1], 1 }
 0x48a   :  { %1245 = vsyncpa [#allocation8], 1 }
 0x48b   :  { %1247 = vsyncpa [#allocation8 + $0x1], 1 }

</bundles_post_ra>
